<compile_context>
chip_gen: v6e
topology: v6e:2x2x1
jax: 0.10.0
libtpu: 0.0.40
codegen_flags: <defaults>
</compile_context>

<pallas_src>
import jax
import jax.numpy as jnp
from jax import lax
from jax.experimental import pallas as pl
from jax.experimental.pallas import tpu as pltpu


_K = 5                    # conv kernel size
_WIN = _K + 1             # shared pooling window = K + pool_stride - 1 = 6
_R = _WIN * _WIN          # 36 window taps shared by all 4 pool positions
_R_PAD = 48               # padded reduction length (multiple of 16 for bf16)
_C_PAD = 8                # padded Cout = 6
_TAPS = 4                 # 2x2 max-pool taps


def _round_up(x, m):
    return (x + m - 1) // m * m


def _feature_kernel(p_ref, w_ref, b_ref, o_ref):
    """Fused conv-GEMM (all 4 pool taps from one shared-window MXU call)
    + tap-max + bias + ReLU.

    p_ref: (_R_PAD, TM) bf16   shared 6x6-window im2col slab, M tile on lanes.
    w_ref: (4*_C_PAD, _R_PAD) bf16   four 8-row tap bands of the conv weights.
    b_ref: (_C_PAD, 1) f32     padded bias.
    o_ref: (_C_PAD, TM) f32    pooled + ReLU output tile (lane-dense).
    """
    z = jnp.dot(w_ref[...], p_ref[...], preferred_element_type=jnp.float32)
    # 2x2 max-pool = max over the four sublane-aligned 8-row groups of z.
    m01 = jnp.maximum(z[0:_C_PAD], z[_C_PAD:2 * _C_PAD])
    m23 = jnp.maximum(z[2 * _C_PAD:3 * _C_PAD], z[3 * _C_PAD:4 * _C_PAD])
    pooled = jnp.maximum(m01, m23)
    # Bias once after the tap-max (constant across taps), then ReLU (monotone).
    o_ref[...] = jnp.maximum(pooled + b_ref[...], 0.0)


def feature_extractor(x, w, b, *, tm=8192):
    """x: (N, 1, H, W) f32 NCHW (H, W even);  w: (6, 1, 5, 5);  b: (6,).
    Returns (N, 6, (H-4)//2, (W-4)//2) f32, matching
    MaxPool2d(2,2)(ReLU(Conv2d(1,6,5,stride=1,padding=0)(x))).
    """
    N, Cin, H, W = x.shape
    assert Cin == 1 and H % 2 == 0 and W % 2 == 0 and H >= 6 and W >= 6
    Cout, _, K, _ = w.shape
    assert K == _K and Cout <= _C_PAD
    Ho, Wo = H - K + 1, W - K + 1
    Hp, Wp = Ho // 2, Wo // 2
    M = N * Hp * Wp

    # Lane tile over the pooled-position axis M (multiple of 128).
    TM = min(tm, _round_up(M, 128))
    Mp = _round_up(M, TM)
    n_tiles = Mp // TM

    # ---- im2col prologue: bf16 space-to-depth + 36 contiguous slices --------
    # patch[(ry,rx), (n,i,j)] = img[n, 2i+ry, 2j+rx],  ry,rx in [0,6)
    # With ry=2a+s, rx=2b+t and img2[n,s,t,I,J] = img[n,2I+s,2J+t], each (ry,rx)
    # plane is the CONTIGUOUS slice img2[:, s, t, a:a+Hp, b:b+Wp] -- no strided
    # gather anywhere.
    # TODO(synk): fold this window formation into the kernel (image VMEM-resident,
    # slab built in scratch) to remove the remaining slab read-amplification.
    ximg = x[:, 0].astype(jnp.bfloat16)                               # (N, H, W)
    H2, W2 = H // 2, W // 2
    img2 = ximg.reshape(N, H2, 2, W2, 2).transpose(0, 2, 4, 1, 3)     # (N,2,2,H2,W2)
    rows = []
    for ry in range(_WIN):
        a, s = divmod(ry, 2)
        for rx in range(_WIN):
            bb, t = divmod(rx, 2)
            rows.append(img2[:, s, t, a:a + Hp, bb:bb + Wp])          # (N, Hp, Wp)
    patches = jnp.stack(rows, axis=0).reshape(_R, M)                  # (36, M)
    patches = jnp.pad(patches, ((0, _R_PAD - _R), (0, Mp - M)))       # (48, Mp)

    # ---- weights: one (8, 36) band per pool tap over the shared 6x6 window --
    wf = w.reshape(Cout, K, K).astype(jnp.float32)
    bands = []
    for di in (0, 1):
        for dj in (0, 1):
            wt = jnp.zeros((_C_PAD, _WIN, _WIN), jnp.float32)
            wt = wt.at[:Cout, di:di + K, dj:dj + K].set(wf)
            bands.append(wt.reshape(_C_PAD, _R))
    w_big = jnp.concatenate(bands, axis=0)                            # (32, 36)
    w_big = jnp.pad(w_big, ((0, 0), (0, _R_PAD - _R))).astype(jnp.bfloat16)
    b2 = jnp.pad(b.astype(jnp.float32), (0, _C_PAD - Cout)).reshape(_C_PAD, 1)

    out = pl.pallas_call(
        _feature_kernel,
        out_shape=jax.ShapeDtypeStruct((_C_PAD, Mp), jnp.float32),
        grid=(n_tiles,),
        in_specs=[
            pl.BlockSpec((_R_PAD, TM), lambda i: (0, i)),                    # patches
            pl.BlockSpec((_TAPS * _C_PAD, _R_PAD), lambda i: (0, 0)),        # weights (resident)
            pl.BlockSpec((_C_PAD, 1), lambda i: (0, 0)),                     # bias (resident)
        ],
        out_specs=pl.BlockSpec((_C_PAD, TM), lambda i: (0, i)),
        compiler_params=pltpu.CompilerParams(
            dimension_semantics=("parallel",),
            vmem_limit_bytes=32 * 1024 * 1024),
    )(patches, w_big, b2)

    # Padded columns M..Mp contain ReLU(bias) garbage -> this slice is required.
    out = out[:Cout, :M].reshape(Cout, N, Hp, Wp)
    return jnp.transpose(out, (1, 0, 2, 3))


def _reference(x, w, b):
    y = lax.conv_general_dilated(
        x, w, window_strides=(1, 1), padding="VALID",
        dimension_numbers=("NCHW", "OIHW", "NCHW"))
    y = y + b[None, :, None, None]
    y = jnp.maximum(y, 0.0)
    y = lax.reduce_window(y, -jnp.inf, lax.max,
                          (1, 1, 2, 2), (1, 1, 2, 2), "VALID")
    return y


if __name__ == "__main__":
    key = jax.random.PRNGKey(0)
    kx, kw, kb = jax.random.split(key, 3)

    # MNIST-like input: batch=2, 1 channel, 28x28.
    x = jax.random.normal(kx, (2, 1, 28, 28), dtype=jnp.float32)
    w = 0.1 * jax.random.normal(kw, (6, 1, 5, 5), dtype=jnp.float32)
    b = 0.1 * jax.random.normal(kb, (6,), dtype=jnp.float32)

    fe = jax.jit(feature_extractor, static_argnames=("tm",))
    # tm=128 forces a multi-step grid (M=288 -> 3 tiles) to exercise the tiling.
    out = jax.block_until_ready(fe(x, w, b, tm=128))
    ref = jax.block_until_ready(_reference(x, w, b))

    assert out.shape == ref.shape == (2, 6, 12, 12), out.shape
    # bf16 patch/weight shipping (f32 MXU accumulation) -> slightly loose tol.
    max_err = float(jnp.max(jnp.abs(out - ref)))
    assert jnp.allclose(out, ref, atol=3e-2, rtol=3e-2), max_err

    print("KERNEL_OK")
</pallas_src>

<mosaic_0001>
module attributes {stable_mosaic.version = 11 : i64} {
  func.func @_feature_kernel(%arg0: i32, %arg1: memref<48x128xbf16, #tpu.memory_space<vmem>>, %arg2: memref<32x48xbf16, #tpu.memory_space<vmem>>, %arg3: memref<8x1xf32, #tpu.memory_space<vmem>>, %arg4: memref<8x128xf32, #tpu.memory_space<vmem>>) attributes {dimension_semantics = [#tpu.dimension_semantics<parallel>], iteration_bounds = array<i64: 3>, scalar_prefetch = 0 : i64, scratch_operands = 0 : i64, tpu.core_type = #tpu.core_type<tc>, window_params = [{transform_indices = @transform_0, window_bounds = array<i64: 48, 128>}, {pipeline_mode = #tpu.pipeline_mode<synchronous>, transform_indices = @transform_1, window_bounds = array<i64: 32, 48>}, {pipeline_mode = #tpu.pipeline_mode<synchronous>, transform_indices = @transform_2, window_bounds = array<i64: 8, 1>}, {transform_indices = @transform_3, window_bounds = array<i64: 8, 128>}]} {
    %c0 = arith.constant 0 : index
    %c0_0 = arith.constant 0 : index
    %0 = vector.load %arg2[%c0, %c0_0] : memref<32x48xbf16, #tpu.memory_space<vmem>>, vector<32x48xbf16>
    %c0_1 = arith.constant 0 : index
    %c0_2 = arith.constant 0 : index
    %1 = vector.load %arg1[%c0_1, %c0_2] : memref<48x128xbf16, #tpu.memory_space<vmem>>, vector<48x128xbf16>
    %cst = arith.constant dense<0.000000e+00> : vector<32x128xf32>
    %2 = tpu.matmul %0, %1, %cst {dimension_numbers = #tpu.dot_dimension_numbers<[1], [0], [0], [1], [0, 0, 1, 1], [], []>} : vector<32x48xbf16>, vector<48x128xbf16>, vector<32x128xf32> -> vector<32x128xf32>
    %3 = vector.extract_strided_slice %2 {offsets = [0, 0], sizes = [8, 128], strides = [1, 1]} : vector<32x128xf32> to vector<8x128xf32>
    %4 = vector.extract_strided_slice %2 {offsets = [8, 0], sizes = [8, 128], strides = [1, 1]} : vector<32x128xf32> to vector<8x128xf32>
    %5 = arith.maximumf %3, %4 : vector<8x128xf32>
    %6 = vector.extract_strided_slice %2 {offsets = [16, 0], sizes = [8, 128], strides = [1, 1]} : vector<32x128xf32> to vector<8x128xf32>
    %7 = vector.extract_strided_slice %2 {offsets = [24, 0], sizes = [8, 128], strides = [1, 1]} : vector<32x128xf32> to vector<8x128xf32>
    %8 = arith.maximumf %6, %7 : vector<8x128xf32>
    %9 = arith.maximumf %5, %8 : vector<8x128xf32>
    %c0_3 = arith.constant 0 : index
    %c0_4 = arith.constant 0 : index
    %10 = vector.load %arg3[%c0_3, %c0_4] : memref<8x1xf32, #tpu.memory_space<vmem>>, vector<8x1xf32>
    %11 = vector.broadcast %10 : vector<8x1xf32> to vector<8x128xf32>
    %12 = arith.addf %9, %11 : vector<8x128xf32>
    %cst_5 = arith.constant 0.000000e+00 : f32
    %13 = vector.broadcast %cst_5 : f32 to vector<8x128xf32>
    %14 = arith.maximumf %12, %13 : vector<8x128xf32>
    %c0_6 = arith.constant 0 : index
    %c0_7 = arith.constant 0 : index
    %15 = vector.load %arg4[%c0_6, %c0_7] : memref<8x128xf32, #tpu.memory_space<vmem>>, vector<8x128xf32>
    tpu.vector_store %arg4[%c0_6, %c0_7], %14 {strides = array<i32>} : memref<8x128xf32, #tpu.memory_space<vmem>>, vector<8x128xf32>,
    return
  }
  func.func @transform_0(%arg0: i32) -> (i32, i32) {
    %c0_i32 = arith.constant 0 : i32
    %c0_i32_0 = arith.constant 0 : i32
    return %c0_i32, %arg0 : i32, i32
  }
  func.func @transform_1(%arg0: i32) -> (i32, i32) {
    %c0_i32 = arith.constant 0 : i32
    %c0_i32_0 = arith.constant 0 : i32
    %c0_i32_1 = arith.constant 0 : i32
    return %c0_i32, %c0_i32_0 : i32, i32
  }
  func.func @transform_2(%arg0: i32) -> (i32, i32) {
    %c0_i32 = arith.constant 0 : i32
    %c0_i32_0 = arith.constant 0 : i32
    %c0_i32_1 = arith.constant 0 : i32
    return %c0_i32, %c0_i32_0 : i32, i32
  }
  func.func @transform_3(%arg0: i32) -> (i32, i32) {
    %c0_i32 = arith.constant 0 : i32
    %c0_i32_0 = arith.constant 0 : i32
    return %c0_i32, %arg0 : i32, i32
  }
}

</mosaic_0001>

<bundles_post_ra>
// kernel: feature_extractor.1
= control target key start
LH: loop header
LB: loop body
LE: loop exit
PB: predicated region body
PF: predicated region fallthrough
CT: control target
= control target key end

     0   :  { %s507_s12 = smov 0   ;;  %s509_s13 = smov 0   ;;  %s572_s0 = inlined_call_operand.vmem [shape: bf16[48,384], index: 0, kind: input, shape index: {}]   ;;  %s573_s1 = inlined_call_operand.vmem [shape: bf16[32,48], index: 1, kind: input, shape index: {}]   ;;  %s574_s2 = inlined_call_operand.vmem [shape: f32[8,1], index: 2, kind: input, shape index: {}]   ;;  %s575_s3 = inlined_call_operand.vmem [shape: f32[8,384], index: 3, kind: output, shape index: {}]  }
   0x1   :  { %s511_s14 = smov 0  }
   0x2 LB: > { %s398_s15 = sadd.s32 4294967295, %s484_s14   ;;  %s524_s16 = sadd.s32 1, %s484_s14   ;;  %s484_s14 = sphi %s511_s14, %s578_s14   ;;  %s480_s13 = sphi %s509_s13, %s577_s13   ;;  %s476_s12 = sphi %s507_s12, %s576_s12  }
   0x3   : > { %s17_s17 = ssub.s32 %s484_s14, %s524_s16  ;;  %s20_s18 = sadd.s32 1, %s480_s13 }
   0x4   : > { %p18_p0 = scmp.eq.s32.totalorder %s17_s17, 0  ;;  %p27_p1 = scmp.ne.s32.totalorder %s480_s13, %s476_s12 }
   0x5   : > { %p28_p2 = scmp.eq.s32.totalorder %s484_s14, 0  ;;  %p401_p4 = scmp.ge.s32.totalorder %s484_s14, 3 }
   0x6   : > { %s533_s19 = scalar_select %p18_p0, %s480_s13, %s20_s18  }
   0x7   : > { %p29_p3 = por %p28_p2, %p27_p1  ;;  %127 = sbr.rel (%p401_p4) target bundleno = 20 (0x14), region = 24 }
   0xc   : > { %130 = sbr.rel (!%p29_p3) target bundleno = 20 (0x14), region = 28  ;;  %s132_s20 = sand.u32 (%p29_p3), 1, %s480_s13  }
   0xd   : > { %s402_s21 = sshll.u32 (%p29_p3), %s484_s14, 2  ;;  %s429_s22 = smul.u32 (%p29_p3), 24, %s132_s20 }
   0xe   : > { %s136_s25 = scalar_lea.vmem (%p29_p3), %s572_s0, %s402_s21 }
   0xf   : > { %v153_v0 = vld [vmem:[%s136_s25] sm:$0xf] (%p29_p3)  ;;  %v155_v1 = vld [vmem:[%s136_s25 + $0xc] sm:$0xf] (%p29_p3)  ;;  %v157_v2 = vld [vmem:[%s136_s25 + $0x18] sm:$0xf] (%p29_p3) }
  0x10   : > { %v159_v3 = vld [vmem:[%s136_s25 + $0x24] sm:$0xf] (%p29_p3)  ;;  %v161_v4 = vld [vmem:[%s136_s25 + $0x30] sm:$0xf] (%p29_p3)  ;;  %s134_s26 = scalar_lea.vmem (%p29_p3), [#allocation2], %s429_s22 }
  0x11   : > { %154 = vst [vmem:[%s134_s26] sm:$0xf] %v153_v0  ;;  %156 = vst [vmem:[%s134_s26 + $0x4] sm:$0xf] %v155_v1  ;;  %v163_v5 = vld [vmem:[%s136_s25 + $0x3c] sm:$0xf] }
  0x12   : > { %158 = vst [vmem:[%s134_s26 + $0x8] sm:$0xf] %v157_v2  ;;  %160 = vst [vmem:[%s134_s26 + $0xc] sm:$0xf] %v159_v3 }
  0x13   : > { %162 = vst [vmem:[%s134_s26 + $0x10] sm:$0xf] %v161_v4  ;;  %164 = vst [vmem:[%s134_s26 + $0x14] sm:$0xf] %v163_v5 }
  0x14 PF: > { %p403_p5 = scmp.ge.s32.totalorder %s484_s14, 1  ;;  %p199_p6 = scmp.lt.s32.totalorder %s484_s14, 4 }
  0x16   : > { %p200_p7 = pnand %p403_p5, %p199_p6 }
  0x17   : > { %s206_s27 = sand.u32 (!%p200_p7), 1, %s476_s12   ;;  %p228_p8 = scmp.lt.s32.totalorder (!%p200_p7), %s398_s15, 2 }
  0x18   : > { %203 = sbr.rel (%p200_p7) target bundleno = 251 (0xfb), region = 69 }
  0x19   : > { %s430_s30 = smul.u32 (!%p200_p7), 24, %s206_s27 }
  0x1b   : > { %s208_s6 = scalar_lea.vmem (!%p200_p7), [#allocation2], %s430_s30 }
  0x1d   : > { %v460_v6 = vld [vmem:[%s573_s1] sm:$0xff]   ;;  %vm271_vm0 = vcmask 392192   ;;  %v486_v8 = vmov 0   ;;  %v457_v9 = vld [vmem:[%s208_s6 + $0x10] sm:$0xff]   ;;  %s580_s15 = smov (!%p228_p8, %s398_s15), 2 }
  0x1e   : > { %425 = vmatprep.mubr.msk.bf16.mxu0 %vm271_vm0, %v460_v6  ;;  %v330_v7 = vld [vmem:[%s574_s2] sm:$0xff]  ;;  %456 = vset.pattern.permute.xlu0 %v486_v8  ;;  %v461_v12 = vld [vmem:[%s573_s1 + $0x8] sm:$0xff]   ;;  %s404_s9 = sshll.u32 %s580_s15, 3 }
  0x1f   : > { %333 = vperm.xlu0 %456, %v330_v7   ;;  %v458_v10 = vld [vmem:[%s208_s6 + $0x8] sm:$0xff]   ;;  %419 = vmatprep.subr.bf16.mxu0 %v457_v9  ;;  %v459_v11 = vld [vmem:[%s208_s6] sm:$0xff]   ;;  %s231_s12 = scalar_lea.vmem %s575_s3, %s404_s9 }
  0x20   : > { %420 = vmatpush3.bf16.msra.mxu0 %v457_v9 }
  0x21   : > { %421 = vmatprep.subr.bf16.mxu0 %v458_v10 }
  0x24   : > { %422 = vmatpush3.bf16.msra.mxu0 %v458_v10 }
  0x25   : > { %423 = vmatprep.subr.bf16.mxu0 %v459_v11 }
  0x28   : > { %424 = vmatpush3.bf16.msra.mxu0 %v459_v11 }
  0x2b   : > { %426 = vmatmul.mubr.msk.bf16.vlgmr.msra.gmra.mxu0 %vm271_vm0, %v461_v12 }
  0x9a   : > { %v334_v19 = vpop.permute.xlu0 %333 }
  0xeb   : > { %v427_v13 = vpop.f32.mrf.mxu0 }
  0xed   : > { %v312_v14 = vpop.f32.mrf.mxu0 }
  0xef   : > { %v428_v15 = vpop.f32.mrf.mxu0 }
  0xf0   : > { %v328_v17 = vmax.f32 %v427_v13, %v428_v15 }
  0xf1   : > { %v315_v16 = vpop.f32.mrf.mxu0 }
  0xf2   : > { %v327_v18 = vmax.f32 %v312_v14, %v315_v16 }
  0xf4   : > { %v329_v20 = vmax.f32 %v327_v18, %v328_v17 }
  0xf6   : > { %v336_v21 = vadd.f32 %v334_v19, %v329_v20 }
  0xf8   : > { %v337_v22 = vmax.f32 %v336_v21, 0.0 }
  0xfa   : > { %338 = vst [vmem:[%s231_s12] sm:$0xff] %v337_v22 }
  0xfb PF: > { %p10_p9 = scmp.ge.s32.totalorder %s524_s16, 5   ;;  %s576_s12 = smov %s480_s13 }
  0xfc   : > { %s577_s13 = smov %s533_s19  ;;  %s578_s14 = smov %s524_s16 }
  0xfd   :  { %12 = sbr.rel (!%p10_p9) target bundleno = 2 (0x2), region = 108 }

</bundles_post_ra>
